<compile_context>
chip_gen: v7x
topology: tpu7x:2x2x1
jax: 0.10.0
libtpu: 0.0.40
codegen_flags: <defaults>
</compile_context>

<pallas_src>
import functools

import jax
import jax.numpy as jnp
from jax.experimental import pallas as pl
from jax.experimental.pallas import tpu as pltpu


# ---------------------------------------------------------------------------
# Budget helpers
# ---------------------------------------------------------------------------
def _round_up(x, m):
    return (x + m - 1) // m * m


def _tpu_vmem_capacity_bytes():
    """Per-core VMEM capacity; conservative 64 MiB (v7x) fallback."""
    try:
        info = pltpu.get_tpu_info()
        cap = getattr(info, "vmem_capacity_bytes", None)
        if cap:
            return int(cap)
    except Exception:
        pass
    return 64 << 20


def _block_need_bytes(block_elems, itemsize):
    # in + out blocks double-buffered (4x) + f32 temporaries for the sum
    # upcast (block_elems * 4) + weights / gate / compiler scratch headroom.
    return 4 * block_elems * itemsize + 4 * block_elems + (4 << 20)


def _vmem_limit(need_bytes, usable_bytes):
    return int(max(32 << 20, min(usable_bytes, need_bytes)))


# ---------------------------------------------------------------------------
# Single-pass fused kernel: (TB, C, HW) block per grid step.
# Column orientation (C on sublanes) everywhere, so the (C, 1) gate broadcasts
# against the (C, HW) tile with no relayout.
# ---------------------------------------------------------------------------
def _fused_kernel(x_ref, w1_ref, w2_ref, o_ref):
    x = x_ref[...]                                     # (TB, C, HW), native dtype
    tb = x.shape[0]
    inv_hw = jnp.float32(1.0 / x.shape[-1])
    w1 = w1_ref[...].astype(jnp.float32)               # (hidden, C)
    w2 = w2_ref[...].astype(jnp.float32)               # (C, hidden)

    # Pooled stats: max in native dtype, sum accumulated in f32, avg = sum/HW.
    max_cols, avg_cols = [], []
    for b in range(tb):                                # static unroll (tb <= 16)
        xb = x[b]                                      # (C, HW)
        max_cols.append(jnp.max(xb, axis=-1, keepdims=True).astype(jnp.float32))
        avg_cols.append(
            jnp.sum(xb, axis=-1, keepdims=True, dtype=jnp.float32) * inv_hw)

    # One stacked MLP for all batches and both stats: pooled (C, 2*TB).
    pooled = jnp.concatenate(max_cols + avg_cols, axis=-1)            # (C, 2*TB)
    h = jnp.maximum(jnp.dot(w1, pooled, preferred_element_type=jnp.float32), 0.0)
    o = jnp.dot(w2, h, preferred_element_type=jnp.float32)            # (C, 2*TB)
    gate = jax.nn.sigmoid(o[:, :tb] + o[:, tb:])                      # (C, TB)

    for b in range(tb):
        g = gate[:, b:b + 1].astype(x.dtype)                          # (C, 1)
        o_ref[b] = (x[b] * g).astype(o_ref.dtype)


# ---------------------------------------------------------------------------
# Two-pass kernels: spatially tiled pooling -> (B, C, 2) stats, then gate mul.
# ---------------------------------------------------------------------------
def _pool_kernel(x_ref, stats_ref, max_acc, sum_acc, *, hw):
    s = pl.program_id(1)
    n_s = pl.num_programs(1)

    @pl.when(s == 0)
    def _():
        max_acc[...] = jnp.full_like(max_acc, -jnp.inf)
        sum_acc[...] = jnp.zeros_like(sum_acc)

    x = x_ref[...]                                     # (1, C, TS), native dtype
    ts = x.shape[-1]

    def accumulate(xm, xs):
        max_acc[...] = jnp.maximum(
            max_acc[...],
            jnp.max(xm, axis=-1, keepdims=True).astype(jnp.float32))
        sum_acc[...] = sum_acc[...] + jnp.sum(
            xs, axis=-1, keepdims=True, dtype=jnp.float32)

    if hw % ts != 0:
        # Only the last tile is ragged: interior tiles take the plain reduce,
        # the padded lanes of the final tile are masked (-inf for max, 0 sum).
        @pl.when(s != n_s - 1)
        def _():
            accumulate(x, x)

        @pl.when(s == n_s - 1)
        def _():
            lane = jax.lax.broadcasted_iota(jnp.int32, x.shape, 2) + s * ts
            valid = lane < hw
            neg = jnp.asarray(-jnp.inf, dtype=x.dtype)
            zero = jnp.asarray(0, dtype=x.dtype)
            accumulate(jnp.where(valid, x, neg), jnp.where(valid, x, zero))
    else:
        accumulate(x, x)

    @pl.when(s == n_s - 1)
    def _():
        avg = sum_acc[...] * jnp.float32(1.0 / hw)
        stats_ref[...] = jnp.concatenate([max_acc[...], avg], axis=-1)  # (1,C,2)


def _apply_gate_kernel(x_ref, gate_ref, o_ref):
    # Native-dtype multiply (bf16-native on v6e/v7x); gate already in x.dtype.
    o_ref[...] = (x_ref[...] * gate_ref[...]).astype(o_ref.dtype)


# ---------------------------------------------------------------------------
# Wrappers
# ---------------------------------------------------------------------------
def _single_pass(x_flat, w1, w2, tb, usable):
    b, c, hw = x_flat.shape
    hidden = w1.shape[0]
    need = _block_need_bytes(tb * c * hw, x_flat.dtype.itemsize)
    return pl.pallas_call(
        _fused_kernel,
        out_shape=jax.ShapeDtypeStruct((b, c, hw), x_flat.dtype),
        grid=(b // tb,),
        in_specs=[
            pl.BlockSpec((tb, c, hw), lambda i: (i, 0, 0)),
            pl.BlockSpec((hidden, c), lambda i: (0, 0)),
            pl.BlockSpec((c, hidden), lambda i: (0, 0)),
        ],
        out_specs=pl.BlockSpec((tb, c, hw), lambda i: (i, 0, 0)),
        compiler_params=pltpu.CompilerParams(
            dimension_semantics=("parallel",),
            vmem_limit_bytes=_vmem_limit(need, usable),
        ),
    )(x_flat, w1, w2)


def _two_pass(x_flat, w1, w2, spatial_tile, usable):
    b, c, hw = x_flat.shape
    itemsize = x_flat.dtype.itemsize

    if spatial_tile is None:
        # Lane-dense tile sized so double-buffered in+out blocks plus f32
        # temporaries stay comfortably inside the per-generation budget.
        block_target = min(8 << 20, usable // 8)
        spatial_tile = max(128, (block_target // (c * itemsize)) // 128 * 128)
    spatial_tile = _round_up(min(spatial_tile, _round_up(hw, 128)), 128)
    if spatial_tile >= hw:
        spatial_tile = hw                              # single full-extent tile
    n_s = pl.cdiv(hw, spatial_tile)

    vmem_limit = _vmem_limit(_block_need_bytes(c * spatial_tile, itemsize),
                             usable)

    # Pass 1: spatially tiled max/sum pooling -> pooled stats (B, C, 2) f32.
    stats = pl.pallas_call(
        functools.partial(_pool_kernel, hw=hw),
        out_shape=jax.ShapeDtypeStruct((b, c, 2), jnp.float32),
        grid=(b, n_s),
        in_specs=[pl.BlockSpec((1, c, spatial_tile), lambda i, s: (i, 0, s))],
        out_specs=pl.BlockSpec((1, c, 2), lambda i, s: (i, 0, 0)),
        scratch_shapes=[
            pltpu.VMEM((1, c, 1), jnp.float32),        # running max
            pltpu.VMEM((1, c, 1), jnp.float32),        # running sum
        ],
        compiler_params=pltpu.CompilerParams(
            dimension_semantics=("parallel", "arbitrary"),
            vmem_limit_bytes=vmem_limit,
        ),
    )(x_flat)

    # Tiny shared MLP + sigmoid, hoisted out of the streaming pipeline (XLA).
    w1f = w1.astype(jnp.float32)
    w2f = w2.astype(jnp.float32)
    pooled = jnp.concatenate([stats[:, :, 0], stats[:, :, 1]], axis=0)  # (2B, C)
    h = jnp.maximum(pooled @ w1f.T, 0.0)
    o = h @ w2f.T
    gate = jax.nn.sigmoid(o[:b] + o[b:]).astype(x_flat.dtype)[:, :, None]  # (B,C,1)

    # Pass 2: re-stream x in lane-dense tiles and apply the broadcast gate.
    return pl.pallas_call(
        _apply_gate_kernel,
        out_shape=jax.ShapeDtypeStruct((b, c, hw), x_flat.dtype),
        grid=(b, n_s),
        in_specs=[
            pl.BlockSpec((1, c, spatial_tile), lambda i, s: (i, 0, s)),
            pl.BlockSpec((1, c, 1), lambda i, s: (i, 0, 0)),
        ],
        out_specs=pl.BlockSpec((1, c, spatial_tile), lambda i, s: (i, 0, s)),
        compiler_params=pltpu.CompilerParams(
            dimension_semantics=("parallel", "parallel"),
            vmem_limit_bytes=vmem_limit,
        ),
    )(x_flat, gate)


def channel_attention(x, w1, w2, *, spatial_tile=None, single_pass_max_bytes=None):
    """CBAM channel attention. x: (B, C, H, W); w1: (C//r, C); w2: (C, C//r)."""
    b, c, h, w = x.shape
    hw = h * w
    x_flat = x.reshape(b, c, hw)
    itemsize = x_flat.dtype.itemsize
    per_batch_bytes = c * hw * itemsize

    # Generation-aware VMEM budget (v5e/v6e: 128 MiB, v7x: 64 MiB per TC).
    usable = max(32 << 20, _tpu_vmem_capacity_bytes() - (12 << 20))

    if single_pass_max_bytes is not None:
        fits_single = per_batch_bytes <= single_pass_max_bytes
    else:
        fits_single = _block_need_bytes(c * hw, itemsize) <= usable

    if spatial_tile is None and fits_single:
        # Pack several small per-batch slabs into a ~4 MiB block.
        tb = int(max(1, min(16, (4 << 20) // max(1, per_batch_bytes), b)))
        while b % tb:
            tb -= 1
        out_flat = _single_pass(x_flat, w1, w2, tb, usable)
    else:
        out_flat = _two_pass(x_flat, w1, w2, spatial_tile, usable)
    return out_flat.reshape(b, c, h, w)


# ---------------------------------------------------------------------------
# Pure-JAX reference matching the PyTorch module.
# ---------------------------------------------------------------------------
def _reference(x, w1, w2):
    xf = x.astype(jnp.float32)
    max_pool = jnp.max(xf, axis=(2, 3))
    avg_pool = jnp.mean(xf, axis=(2, 3))

    def mlp(p):
        return jnp.maximum(p @ w1.T, 0.0) @ w2.T

    gate = jax.nn.sigmoid(mlp(max_pool) + mlp(avg_pool))
    return xf * gate[:, :, None, None]


if __name__ == "__main__":
    key = jax.random.PRNGKey(0)
    k_x, k_w1, k_w2, k_x2 = jax.random.split(key, 4)

    ratio = 16
    B, C, H, W = 2, 32, 16, 16          # hidden = C // ratio = 2
    hidden = C // ratio

    x = jax.random.normal(k_x, (B, C, H, W), dtype=jnp.float32)
    # torch.nn.Linear weights: (out_features, in_features), bias=False
    w1 = jax.random.normal(k_w1, (hidden, C), dtype=jnp.float32) * 0.1
    w2 = jax.random.normal(k_w2, (C, hidden), dtype=jnp.float32) * 0.1

    # 1) fused single-pass path (multi-batch blocking: TB=2, one grid step).
    out = jax.block_until_ready(channel_attention(x, w1, w2))
    ref = _reference(x, w1, w2)
    assert out.shape == (B, C, H, W)
    assert jnp.allclose(out, ref, atol=1e-5, rtol=1e-5), "single-pass mismatch"

    # 2) two-pass spatially tiled path with a ragged last tile (HW=324, tile=128)
    #    -> exercises the pl.when-gated lane masking + hoisted MLP.
    H2 = W2 = 18
    x2 = jax.random.normal(k_x2, (B, C, H2, W2), dtype=jnp.float32)
    out2 = jax.block_until_ready(channel_attention(x2, w1, w2, spatial_tile=128))
    ref2 = _reference(x2, w1, w2)
    assert jnp.allclose(out2, ref2, atol=1e-5, rtol=1e-5), "two-pass mismatch"

    # 3) bf16 activations: datapath stays bf16 (max pooling + gate multiply),
    #    sum accumulation and the tiny MLP stay in f32.
    xb = x.astype(jnp.bfloat16)
    outb = jax.block_until_ready(channel_attention(xb, w1, w2))
    refb = _reference(xb, w1, w2)
    assert outb.dtype == jnp.bfloat16
    assert jnp.allclose(outb.astype(jnp.float32), refb, atol=5e-2, rtol=5e-2), \
        "bf16 mismatch"

    print("KERNEL_OK")
</pallas_src>

<mosaic_0001>
module attributes {stable_mosaic.version = 11 : i64} {
  func.func @_fused_kernel(%arg0: i32, %arg1: memref<2x32x256xf32, #tpu.memory_space<vmem>>, %arg2: memref<2x32xf32, #tpu.memory_space<vmem>>, %arg3: memref<32x2xf32, #tpu.memory_space<vmem>>, %arg4: memref<2x32x256xf32, #tpu.memory_space<vmem>>) attributes {dimension_semantics = [#tpu.dimension_semantics<parallel>], iteration_bounds = array<i64: 1>, scalar_prefetch = 0 : i64, scratch_operands = 0 : i64, tpu.core_type = #tpu.core_type<tc>, window_params = [{transform_indices = @transform_0, window_bounds = array<i64: 2, 32, 256>}, {pipeline_mode = #tpu.pipeline_mode<synchronous>, transform_indices = @transform_1, window_bounds = array<i64: 2, 32>}, {pipeline_mode = #tpu.pipeline_mode<synchronous>, transform_indices = @transform_2, window_bounds = array<i64: 32, 2>}, {transform_indices = @transform_3, window_bounds = array<i64: 2, 32, 256>}]} {
    %c0 = arith.constant 0 : index
    %c0_0 = arith.constant 0 : index
    %c0_1 = arith.constant 0 : index
    %0 = vector.load %arg1[%c0, %c0_0, %c0_1] : memref<2x32x256xf32, #tpu.memory_space<vmem>>, vector<2x32x256xf32>
    %c0_2 = arith.constant 0 : index
    %c0_3 = arith.constant 0 : index
    %1 = vector.load %arg2[%c0_2, %c0_3] : memref<2x32xf32, #tpu.memory_space<vmem>>, vector<2x32xf32>
    %c0_4 = arith.constant 0 : index
    %c0_5 = arith.constant 0 : index
    %2 = vector.load %arg3[%c0_4, %c0_5] : memref<32x2xf32, #tpu.memory_space<vmem>>, vector<32x2xf32>
    %3 = vector.extract_strided_slice %0 {offsets = [0, 0, 0], sizes = [1, 32, 256], strides = [1, 1, 1]} : vector<2x32x256xf32> to vector<1x32x256xf32>
    %4 = vector.shape_cast %3 : vector<1x32x256xf32> to vector<32x256xf32>
    %cst = arith.constant dense<0xFF800000> : vector<32xf32>
    %5 = vector.multi_reduction <maximumf>, %4, %cst [1] : vector<32x256xf32> to vector<32xf32>
    %6 = vector.shape_cast %5 : vector<32xf32> to vector<32x1xf32>
    %cst_6 = arith.constant dense<0.000000e+00> : vector<32xf32>
    %7 = vector.multi_reduction <add>, %4, %cst_6 [1] : vector<32x256xf32> to vector<32xf32>
    %8 = vector.shape_cast %7 : vector<32xf32> to vector<32x1xf32>
    %cst_7 = arith.constant 3.906250e-03 : f32
    %9 = vector.broadcast %cst_7 : f32 to vector<32x1xf32>
    %10 = arith.mulf %8, %9 : vector<32x1xf32>
    %11 = vector.extract_strided_slice %0 {offsets = [1, 0, 0], sizes = [1, 32, 256], strides = [1, 1, 1]} : vector<2x32x256xf32> to vector<1x32x256xf32>
    %12 = vector.shape_cast %11 : vector<1x32x256xf32> to vector<32x256xf32>
    %cst_8 = arith.constant dense<0xFF800000> : vector<32xf32>
    %13 = vector.multi_reduction <maximumf>, %12, %cst_8 [1] : vector<32x256xf32> to vector<32xf32>
    %14 = vector.shape_cast %13 : vector<32xf32> to vector<32x1xf32>
    %cst_9 = arith.constant dense<0.000000e+00> : vector<32xf32>
    %15 = vector.multi_reduction <add>, %12, %cst_9 [1] : vector<32x256xf32> to vector<32xf32>
    %16 = vector.shape_cast %15 : vector<32xf32> to vector<32x1xf32>
    %cst_10 = arith.constant 3.906250e-03 : f32
    %17 = vector.broadcast %cst_10 : f32 to vector<32x1xf32>
    %18 = arith.mulf %16, %17 : vector<32x1xf32>
    %19 = tpu.concatenate %6, %14, %10, %18 in 1 : vector<32x1xf32>, vector<32x1xf32>, vector<32x1xf32>, vector<32x1xf32> -> vector<32x4xf32>
    %cst_11 = arith.constant dense<0.000000e+00> : vector<2x4xf32>
    %20 = tpu.matmul %1, %19, %cst_11 {dimension_numbers = #tpu.dot_dimension_numbers<[1], [0], [0], [1], [0, 0, 1, 1], [], []>} : vector<2x32xf32>, vector<32x4xf32>, vector<2x4xf32> -> vector<2x4xf32>
    %cst_12 = arith.constant 0.000000e+00 : f32
    %21 = vector.broadcast %cst_12 : f32 to vector<2x4xf32>
    %22 = arith.maximumf %20, %21 : vector<2x4xf32>
    %cst_13 = arith.constant dense<0.000000e+00> : vector<32x4xf32>
    %23 = tpu.matmul %2, %22, %cst_13 {dimension_numbers = #tpu.dot_dimension_numbers<[1], [0], [0], [1], [0, 0, 1, 1], [], []>} : vector<32x2xf32>, vector<2x4xf32>, vector<32x4xf32> -> vector<32x4xf32>
    %24 = vector.extract_strided_slice %23 {offsets = [0, 0], sizes = [32, 2], strides = [1, 1]} : vector<32x4xf32> to vector<32x2xf32>
    %25 = vector.extract_strided_slice %23 {offsets = [0, 2], sizes = [32, 2], strides = [1, 1]} : vector<32x4xf32> to vector<32x2xf32>
    %26 = arith.addf %24, %25 : vector<32x2xf32>
    %27 = arith.negf %26 : vector<32x2xf32>
    %28 = math.exp %27 : vector<32x2xf32>
    %cst_14 = arith.constant 1.000000e+00 : f32
    %29 = vector.broadcast %cst_14 : f32 to vector<32x2xf32>
    %30 = arith.addf %29, %28 : vector<32x2xf32>
    %31 = arith.divf %29, %30 : vector<32x2xf32>
    %32 = vector.extract_strided_slice %31 {offsets = [0, 0], sizes = [32, 1], strides = [1, 1]} : vector<32x2xf32> to vector<32x1xf32>
    %33 = vector.extract_strided_slice %0 {offsets = [0, 0, 0], sizes = [1, 32, 256], strides = [1, 1, 1]} : vector<2x32x256xf32> to vector<1x32x256xf32>
    %34 = vector.shape_cast %33 : vector<1x32x256xf32> to vector<32x256xf32>
    %35 = vector.broadcast %32 : vector<32x1xf32> to vector<32x256xf32>
    %36 = arith.mulf %34, %35 : vector<32x256xf32>
    %c0_15 = arith.constant 0 : index
    %c0_16 = arith.constant 0 : index
    %c0_17 = arith.constant 0 : index
    %37 = vector.load %arg4[%c0_15, %c0_16, %c0_17] : memref<2x32x256xf32, #tpu.memory_space<vmem>>, vector<1x32x256xf32>
    %38 = vector.shape_cast %37 : vector<1x32x256xf32> to vector<32x256xf32>
    %39 = vector.shape_cast %36 : vector<32x256xf32> to vector<1x32x256xf32>
    tpu.vector_store %arg4[%c0_15, %c0_16, %c0_17], %39 {strides = array<i32>} : memref<2x32x256xf32, #tpu.memory_space<vmem>>, vector<1x32x256xf32>,
    %40 = vector.extract_strided_slice %31 {offsets = [0, 1], sizes = [32, 1], strides = [1, 1]} : vector<32x2xf32> to vector<32x1xf32>
    %41 = vector.extract_strided_slice %0 {offsets = [1, 0, 0], sizes = [1, 32, 256], strides = [1, 1, 1]} : vector<2x32x256xf32> to vector<1x32x256xf32>
    %42 = vector.shape_cast %41 : vector<1x32x256xf32> to vector<32x256xf32>
    %43 = vector.broadcast %40 : vector<32x1xf32> to vector<32x256xf32>
    %44 = arith.mulf %42, %43 : vector<32x256xf32>
    %c1 = arith.constant 1 : index
    %c0_18 = arith.constant 0 : index
    %c0_19 = arith.constant 0 : index
    %45 = vector.load %arg4[%c1, %c0_18, %c0_19] : memref<2x32x256xf32, #tpu.memory_space<vmem>>, vector<1x32x256xf32>
    %46 = vector.shape_cast %45 : vector<1x32x256xf32> to vector<32x256xf32>
    %47 = vector.shape_cast %44 : vector<32x256xf32> to vector<1x32x256xf32>
    tpu.vector_store %arg4[%c1, %c0_18, %c0_19], %47 {strides = array<i32>} : memref<2x32x256xf32, #tpu.memory_space<vmem>>, vector<1x32x256xf32>,
    return
  }
  func.func @transform_0(%arg0: i32) -> (i32, i32, i32) {
    %c0_i32 = arith.constant 0 : i32
    %c0_i32_0 = arith.constant 0 : i32
    %c0_i32_1 = arith.constant 0 : i32
    return %arg0, %c0_i32, %c0_i32_0 : i32, i32, i32
  }
  func.func @transform_1(%arg0: i32) -> (i32, i32) {
    %c0_i32 = arith.constant 0 : i32
    %c0_i32_0 = arith.constant 0 : i32
    %c0_i32_1 = arith.constant 0 : i32
    return %c0_i32, %c0_i32_0 : i32, i32
  }
  func.func @transform_2(%arg0: i32) -> (i32, i32) {
    %c0_i32 = arith.constant 0 : i32
    %c0_i32_0 = arith.constant 0 : i32
    %c0_i32_1 = arith.constant 0 : i32
    return %c0_i32, %c0_i32_0 : i32, i32
  }
  func.func @transform_3(%arg0: i32) -> (i32, i32, i32) {
    %c0_i32 = arith.constant 0 : i32
    %c0_i32_0 = arith.constant 0 : i32
    %c0_i32_1 = arith.constant 0 : i32
    return %arg0, %c0_i32, %c0_i32_0 : i32, i32, i32
  }
}

</mosaic_0001>

<bundles_post_ra>
// kernel: tpu_custom_call.1
= control target key start
LH: loop header
LB: loop body
LE: loop exit
PB: predicated region body
PF: predicated region fallthrough
CT: control target
= control target key end

     0   :  { %8 = vsyncpa [#allocation3], 0  ;;  %s723_s0 = inlined_call_operand.hbm [shape: f32[2,32,256], index: 0, kind: input, shape index: {}]   ;;  %s724_s1 = inlined_call_operand.vmem [shape: f32[2,32], index: 1, kind: input, shape index: {}]   ;;  %s725_s2 = inlined_call_operand.vmem [shape: f32[32,2], index: 2, kind: input, shape index: {}]   ;;  %s726_s3 = inlined_call_operand.hbm [shape: f32[2,32,256], index: 3, kind: output, shape index: {}]  }
   0x1   :  { %9 = vsyncpa [#allocation4], 0  ;;  %s552_s12 = smov [#allocation2]   ;;  %s504_s16 = scalar_lea.hbm %s723_s0, 2048 }
   0x2   :  { %s15_s13 = sshll.u32 %s552_s12, 4  ;;  %p505_p0 = scmp.ne.s32.totalorder %s723_s0, %s504_s16  ;;  %s16_s13 = int_to_ptr.vmem [resolvable:$true] %s15_s13 }
   0x3   :  { %p508_p1 = scmp.lt.u32.totalorder %s504_s16, %s723_s0 }
   0x5   :  { %p510_p2 = pnand %p508_p1, %p505_p0 }
   0x7   :  { %513 = shalt.err (!%p510_p2)
}
   0x8   :  { %s514_s21 = scalar_lea.vmem %s16_s13, 2048  ;;  %p519_p4 = scmp.lt.s32.totalorder %s16_s13, %s16_s13 }
   0x9   :  { %p515_p3 = scmp.ne.s32.totalorder %s16_s13, %s514_s21  ;;  %p520_p5 = scmp.lt.s32.totalorder %s514_s21, %s514_s21 }
   0xb   :  { %p521_p6 = por %p520_p5, %p519_p4 }
   0xd   :  { %p522_p7 = pnand %p521_p6, %p515_p3 }
   0xf   :  { %525 = shalt.err (!%p522_p7)
}
  0x10   :  { %s553_s22 = smov 256   ;;  %s554_s23 = smov 16  }
  0x11   :  { %21 = dma.hbm_to_vmem [thread:$0]  %s723_s0, 2048, %s16_s13, [#allocation3], %s553_s22, %s553_s22, %s554_s23  }
  0x12   :  { %548 = dma.done.wait [#allocation3], 2048  }
  0x13   :  { %549 = vsyncadd [#allocation3], 4294965248  ;;  %v597_v0 = vld [vmem:[#allocation2] sm:$0xff]  ;;  %v599_v1 = vld [vmem:[#allocation2 + $0x8] sm:$0xff]  ;;  %v555_v32 = vmov 0.0|0.0   ;;  %vm556_vm0 = vmmov 0  }
  0x14   :  { %v601_v2 = vld [vmem:[#allocation2 + $0x10] sm:$0xff]  ;;  %v62_v3 = vadd.f32 %v599_v1, %v597_v0  ;;  %v50_v4 = vmax.f32 %v597_v0, %v599_v1  ;;  %v607_v5 = vld [vmem:[#allocation2 + $0x18] sm:$0xff]  ;;  %v613_v8 = vld [vmem:[#allocation2 + $0x40] sm:$0xff]  ;;  %466 = vmatprep.subr.bf16.mxu0 %v555_v32  ;;  %v557_v33 = vmov 0.0   ;;  %vm106_vm1 = vcmask 7168   ;;  %s558_s7 = smov 126  }
  0x15   :  { %v65_v6 = vadd.f32 %v607_v5, %v601_v2  ;;  %v53_v7 = vmax.f32 %v601_v2, %v607_v5  ;;  %v615_v9 = vld [vmem:[#allocation2 + $0x48] sm:$0xff]  ;;  %v617_v10 = vld [vmem:[#allocation2 + $0x50] sm:$0xff]  ;;  %v619_v11 = vld [vmem:[#allocation2 + $0x58] sm:$0xff]  ;;  %455 = vmatprep.mubr.msk.f32.mxu0 %vm556_vm0, %v557_v33  ;;  %vm111_vm2 = vcmask 15360   ;;  %vm116_vm3 = vcmask 23552  }
  0x16   :  { %63 = vadd.xlane.f32.xlu0 %v62_v3  ;;  %51 = vmax.xlane.f32.xlu1 %v50_v4  ;;  %v78_v12 = vmax.f32 %v613_v8, %v615_v9  ;;  %v81_v13 = vmax.f32 %v617_v10, %v619_v11  ;;  %v90_v14 = vadd.f32 %v615_v9, %v613_v8  ;;  %v629_v16 = vld [vmem:[#allocation2 + $0x20] sm:$0xff]  ;;  %v631_v17 = vld [vmem:[#allocation2 + $0x28] sm:$0xff]  ;;  %v633_v18 = vld [vmem:[#allocation2 + $0x30] sm:$0xff]  ;;  %vm121_vm4 = vcmask 261120  }
  0x17   :  { %v93_v15 = vadd.f32 %v619_v11, %v617_v10  ;;  %v635_v19 = vld [vmem:[#allocation2 + $0x38] sm:$0xff]  ;;  %v68_v20 = vadd.f32 %v631_v17, %v629_v16  ;;  %v56_v22 = vmax.f32 %v629_v16, %v631_v17  ;;  %v645_v24 = vld [vmem:[#allocation2 + $0x60] sm:$0xff]  ;;  %v647_v25 = vld [vmem:[#allocation2 + $0x68] sm:$0xff]  ;;  %vm208_vm5 = vcmask 1041408  }
  0x18   :  { %v71_v21 = vadd.f32 %v635_v19, %v633_v18  ;;  %v59_v23 = vmax.f32 %v633_v18, %v635_v19  ;;  %v649_v26 = vld [vmem:[#allocation2 + $0x70] sm:$0xff]  ;;  %v651_v27 = vld [vmem:[#allocation2 + $0x78] sm:$0xff]  ;;  %v84_v28 = vmax.f32 %v645_v24, %v647_v25  ;;  %v96_v30 = vadd.f32 %v647_v25, %v645_v24 }
  0x19   :  { %v87_v29 = vmax.f32 %v649_v26, %v651_v27  ;;  %v99_v31 = vadd.f32 %v651_v27, %v649_v26 }
  0x1a   :  { %66 = vadd.xlane.f32.xlu0 %v65_v6  ;;  %54 = vmax.xlane.f32.xlu1 %v53_v7 }
  0x1e   :  { %79 = vmax.xlane.f32.xlu0 %v78_v12  ;;  %82 = vmax.xlane.f32.xlu1 %v81_v13 }
  0x22   :  { %91 = vadd.xlane.f32.xlu0 %v90_v14  ;;  %94 = vadd.xlane.f32.xlu1 %v93_v15 }
  0x26   :  { %69 = vadd.xlane.f32.xlu0 %v68_v20  ;;  %72 = vadd.xlane.f32.xlu1 %v71_v21  ;;  %v45_v20 = vld [vmem:[%s724_s1] sm:$0x3] }
  0x27   :  { %v46_v21 = vld [vmem:[%s725_s2] sm:$0xff] }
  0x28   :  { %460 = vmatprep.mubr.msk.f32.mxu1 %vm111_vm2, %v46_v21 }
  0x2a   :  { %57 = vmax.xlane.f32.xlu0 %v56_v22  ;;  %60 = vmax.xlane.f32.xlu1 %v59_v23 }
  0x2e   :  { %85 = vmax.xlane.f32.xlu0 %v84_v28  ;;  %88 = vmax.xlane.f32.xlu1 %v87_v29  ;;  %v47_v29 = vld [vmem:[%s725_s2 + $0x8] sm:$0xff] }
  0x32   :  { %97 = vadd.xlane.f32.xlu0 %v96_v30  ;;  %100 = vadd.xlane.f32.xlu1 %v99_v31  ;;  %v48_v30 = vld [vmem:[%s725_s2 + $0x10] sm:$0xff]  ;;  %v49_v31 = vld [vmem:[%s725_s2 + $0x18] sm:$0xff]  ;;  %s561_s2 = smov [#allocation5]  }
  0x33   :  { %s415_s8 = sshll.u32 %s561_s2, 4  ;;  %s416_s8 = int_to_ptr.vmem [resolvable:$true] %s415_s8 }
  0x34   :  { %s526_s9 = scalar_lea.vmem %s416_s8, 2048  ;;  %p531_p9 = scmp.lt.s32.totalorder %s416_s8, %s416_s8 }
  0x35   :  { %p527_p8 = scmp.ne.s32.totalorder %s416_s8, %s526_s9  ;;  %p532_p10 = scmp.lt.s32.totalorder %s526_s9, %s526_s9 }
  0x37   :  { %p533_p11 = por %p532_p10, %p531_p9 }
  0x39   :  { %p534_p12 = pnand %p533_p11, %p527_p8 }
  0xa3   :  { %v64_v34 = vpop.xlane.xlu0 %63  ;;  %v52_v35 = vpop.xlane.xlu1 %51 }
  0xa4   :  { %v74_v42 = vmul.f32 0.00390625, %v64_v34 }
  0xa7   :  { %v67_v36 = vpop.xlane.xlu0 %66  ;;  %v55_v37 = vpop.xlane.xlu1 %54 }
  0xa8   :  { %v75_v43 = vmul.f32 0.00390625, %v67_v36  ;;  %v559_v36 = vmov 0  }
  0xa9   :  { %482 = vset.pattern.permute.xlu1 %v559_v36  ;;  %483 = vset.pattern.permute.xlu0 %v559_v36 }
  0xab   :  { %v80_v38 = vpop.xlane.xlu0 %79  ;;  %v83_v39 = vpop.xlane.xlu1 %82 }
  0xac   :  { %v107_v40 = vsel %vm106_vm1, %v52_v35, %v80_v38  ;;  %v108_v41 = vsel %vm106_vm1, %v55_v37, %v83_v39 }
  0xad   :  { %v112_v48 = vsel %vm111_vm2, %v107_v40, %v74_v42  ;;  %v113_v49 = vsel %vm111_vm2, %v108_v41, %v75_v43 }
  0xaf   :  { %v92_v44 = vpop.xlane.xlu0 %91  ;;  %v95_v45 = vpop.xlane.xlu1 %94 }
  0xb0   :  { %v102_v46 = vmul.f32 0.00390625, %v92_v44  ;;  %v103_v47 = vmul.f32 0.00390625, %v95_v45 }
  0xb2   :  { %v117_v50 = vsel %vm116_vm3, %v112_v48, %v102_v46  ;;  %v118_v51 = vsel %vm116_vm3, %v113_v49, %v103_v47 }
  0xb3   :  { %v70_v52 = vpop.xlane.xlu0 %69  ;;  %v73_v53 = vpop.xlane.xlu1 %72  ;;  %v467_v54 = vpack.c.bf16 %v118_v51, %v117_v50 }
  0xb4   :  { %v76_v61 = vmul.f32 0.00390625, %v70_v52  ;;  %v77_v62 = vmul.f32 0.00390625, %v73_v53 }
  0xb5   :  { %468 = vmatpush3.bf16.msra.mxu0 %v467_v54 }
  0xb6   :  { %469 = vmatprep.subr.bf16.mxu0 %v555_v32 }
  0xb7   :  { %v58_v55 = vpop.xlane.xlu0 %57  ;;  %v61_v56 = vpop.xlane.xlu1 %60 }
  0xbb   :  { %v86_v57 = vpop.xlane.xlu0 %85  ;;  %v89_v58 = vpop.xlane.xlu1 %88 }
  0xbc   :  { %v109_v59 = vsel %vm106_vm1, %v58_v55, %v86_v57  ;;  %v110_v60 = vsel %vm106_vm1, %v61_v56, %v89_v58 }
  0xbd   :  { %v114_v7 = vsel %vm111_vm2, %v109_v59, %v76_v61  ;;  %v115_v12 = vsel %vm111_vm2, %v110_v60, %v77_v62  ;;  %v560_v59 = vmov 1  }
  0xbf   :  { %v98_v63 = vpop.xlane.xlu0 %97  ;;  %v101_v3 = vpop.xlane.xlu1 %100 }
  0xc0   :  { %v104_v4 = vmul.f32 0.00390625, %v98_v63  ;;  %v105_v6 = vmul.f32 0.00390625, %v101_v3 }
  0xc2   :  { %v119_v13 = vsel %vm116_vm3, %v114_v7, %v104_v4  ;;  %v120_v14 = vsel %vm116_vm3, %v115_v12, %v105_v6 }
  0xc3   :  { %v470_v15 = vpack.c.bf16 %v120_v14, %v119_v13 }
  0xc5   :  { %471 = vmatpush3.bf16.msra.mxu0 %v470_v15 }
  0xc8   :  { %456 = vmatmul.mubr.msk.f32.vlgmr.msra.gmra.mrb[0].mxu0 %vm121_vm4, %v45_v20 }
 0x19b   :  { %v191_v22 = vpop.f32.mrb[0].mxu0 }
 0x19c   :  { %v195_v23 = vmax.f32 %v191_v22, 0.0  ;;  %v457_v28 = vpop.f32.mrb[1].mxu0 }
 0x19e   :  { %458 = vmatprep.subr.msk.mxu1 %vm208_vm5, %v195_v23 }
 0x19f   :  { %459 = vmatpush3.msk.msra.mxu1 %vm208_vm5, %v195_v23 }
 0x1a0   :  { %461 = vmatmul.mubr.msk.f32.vlgmr.msra.gmra.mrb[0].mxu1 %vm111_vm2, %v47_v29 }
 0x1a1   :  { %463 = vmatprep.mubr.msk.f32.mxu1 %vm111_vm2, %v48_v30 }
 0x1a4   :  { %464 = vmatmul.mubr.msk.f32.gmra.mrb[2].mxu1 %vm111_vm2, %v49_v31 }
 0x273   :  { %v462_v32 = vpop.f32.mrb[0].mxu1 }
 0x274   :  { %303 = vrot.lane.b32.xlu1 %v462_v32, %s558_s7  ;;  %v278_v33 = vpop.f32.mrb[1].mxu1 }
 0x275   :  { %301 = vrot.lane.b32.xlu0 %v278_v33, %s558_s7 }
 0x277   :  { %v465_v34 = vpop.f32.mrb[2].mxu1 }
 0x278   :  { %v288_v35 = vpop.f32.mrb[3].mxu1 }
 0x279   :  { %305 = vrot.lane.b32.xlu1 %v288_v35, %s558_s7 }
 0x27d   :  { %307 = vrot.lane.b32.xlu1 %v465_v34, %s558_s7 }
 0x2e6   :  { %v304_v37 = vpop.permute.xlu1 %303 }
 0x2e7   :  { %v314_v38 = vadd.f32 %v462_v32, %v304_v37  ;;  %v302_v39 = vpop.permute.xlu0 %301 }
 0x2e8   :  { %v313_v40 = vadd.f32 %v302_v39, %v278_v33 }
 0x2e9   :  { %v434_v41 = vmul.f32 -1.442695, %v314_v38 }
 0x2ea   :  { %v433_v42 = vmul.f32 -1.442695, %v313_v40 }
 0x2eb   :  { %488 = vpow2.f32 %v434_v41  ;;  %v306_v43 = vpop.permute.xlu1 %305 }
 0x2ec   :  { %490 = vpow2.f32 %v433_v42  ;;  %v315_v44 = vadd.f32 %v306_v43, %v288_v35 }
 0x2ee   :  { %v435_v45 = vmul.f32 -1.442695, %v315_v44 }
 0x2ef   :  { %v308_v46 = vpop.permute.xlu1 %307 }
 0x2f0   :  { %v316_v47 = vadd.f32 %v465_v34, %v308_v46  ;;  %492 = vpow2.f32 %v435_v45 }
 0x2f2   :  { %v436_v48 = vmul.f32 -1.442695, %v316_v47 }
 0x2f4   :  { %494 = vpow2.f32 %v436_v48 }
 0x2f5   :  { %v489_v49 = vpop.eup %488 }
 0x2f6   :  { %v491_v50 = vpop.eup %490  ;;  %v330_v51 = vadd.f32 1.0, %v489_v49 }
 0x2f7   :  { %v329_v52 = vadd.f32 1.0, %v491_v50 }
 0x2f8   :  { %496 = vrcp.f32 %v330_v51 }
 0x2f9   :  { %498 = vrcp.f32 %v329_v52 }
 0x2fa   :  { %v493_v53 = vpop.eup %492 }
 0x2fb   :  { %v331_v55 = vadd.f32 1.0, %v493_v53 }
 0x2fe   :  { %v495_v54 = vpop.eup %494 }
 0x2ff   :  { %v332_v56 = vadd.f32 1.0, %v495_v54 }
 0x301   :  { %500 = vrcp.f32 %v332_v56 }
 0x302   :  { %v497_v57 = vpop.eup %496  ;;  %502 = vrcp.f32 %v331_v55 }
 0x303   :  { %v499_v58 = vpop.eup %498  ;;  %348 = vperm.xlu1 %482, %v497_v57  }
 0x304   :  { %343 = vperm.xlu0 %483, %v499_v58  }
 0x307   :  { %484 = vset.pattern.permute.xlu1 %v560_v59 }
 0x308   :  { %378 = vperm.xlu1 %484, %v499_v58  }
 0x30b   :  { %v501_v60 = vpop.eup %500 }
 0x30c   :  { %v503_v61 = vpop.eup %502  ;;  %485 = vset.pattern.permute.xlu1 %v559_v36  ;;  %358 = vperm.xlu0 %483, %v501_v60  }
 0x30d   :  { %353 = vperm.xlu1 %485, %v503_v61  }
 0x310   :  { %486 = vset.pattern.permute.xlu0 %v560_v59 }
 0x311   :  { %487 = vset.pattern.permute.xlu1 %v560_v59  ;;  %382 = vperm.xlu0 %486, %v497_v57  }
 0x312   :  { %386 = vperm.xlu1 %487, %v503_v61  }
 0x316   :  { %390 = vperm.xlu1 %487, %v501_v60  }
 0x382   :  { %v349_v62 = vpop.permute.xlu1 %348 }
 0x383   :  { %v363_v63 = vmul.f32 %v349_v62, %v601_v2  ;;  %v364_v3 = vmul.f32 %v349_v62, %v607_v5  ;;  %v344_v4 = vpop.permute.xlu0 %343 }
 0x384   :  { %v361_v6 = vmul.f32 %v344_v4, %v597_v0  ;;  %v362_v7 = vmul.f32 %v344_v4, %v599_v1 }
 0x385   :  { %371 = vst [vmem:[#allocation5 + $0x10] sm:$0xff] %v363_v63  ;;  %372 = vst [vmem:[#allocation5 + $0x18] sm:$0xff] %v364_v3 }
 0x386   :  { %369 = vst [vmem:[#allocation5] sm:$0xff] %v361_v6  ;;  %370 = vst [vmem:[#allocation5 + $0x8] sm:$0xff] %v362_v7 }
 0x387   :  { %v379_v12 = vpop.permute.xlu1 %378 }
 0x388   :  { %v393_v13 = vmul.f32 %v379_v12, %v613_v8  ;;  %v394_v14 = vmul.f32 %v379_v12, %v615_v9 }
 0x38a   :  { %402 = vst [vmem:[#allocation5 + $0x40] sm:$0xff] %v393_v13  ;;  %403 = vst [vmem:[#allocation5 + $0x48] sm:$0xff] %v394_v14 }
 0x38b   :  { %v359_v15 = vpop.permute.xlu0 %358 }
 0x38c   :  { %v367_v2 = vmul.f32 %v359_v15, %v633_v18  ;;  %v368_v5 = vmul.f32 %v359_v15, %v635_v19  ;;  %v354_v20 = vpop.permute.xlu1 %353 }
 0x38d   :  { %v365_v0 = vmul.f32 %v354_v20, %v629_v16  ;;  %v366_v1 = vmul.f32 %v354_v20, %v631_v17 }
 0x38e   :  { %375 = vst [vmem:[#allocation5 + $0x30] sm:$0xff] %v367_v2  ;;  %376 = vst [vmem:[#allocation5 + $0x38] sm:$0xff] %v368_v5 }
 0x38f   :  { %373 = vst [vmem:[#allocation5 + $0x20] sm:$0xff] %v365_v0  ;;  %374 = vst [vmem:[#allocation5 + $0x28] sm:$0xff] %v366_v1 }
 0x390   :  { %v383_v21 = vpop.permute.xlu0 %382 }
 0x391   :  { %v395_v8 = vmul.f32 %v383_v21, %v617_v10  ;;  %v396_v9 = vmul.f32 %v383_v21, %v619_v11  ;;  %v387_v22 = vpop.permute.xlu1 %386 }
 0x392   :  { %v397_v23 = vmul.f32 %v387_v22, %v645_v24  ;;  %v398_v18 = vmul.f32 %v387_v22, %v647_v25 }
 0x393   :  { %404 = vst [vmem:[#allocation5 + $0x50] sm:$0xff] %v395_v8  ;;  %405 = vst [vmem:[#allocation5 + $0x58] sm:$0xff] %v396_v9 }
 0x394   :  { %406 = vst [vmem:[#allocation5 + $0x60] sm:$0xff] %v397_v23  ;;  %407 = vst [vmem:[#allocation5 + $0x68] sm:$0xff] %v398_v18 }
 0x395   :  { %v391_v16 = vpop.permute.xlu1 %390 }
 0x396   :  { %v399_v17 = vmul.f32 %v391_v16, %v649_v26  ;;  %v400_v19 = vmul.f32 %v391_v16, %v651_v27 }
 0x398   :  { %408 = vst [vmem:[#allocation5 + $0x70] sm:$0xff] %v399_v17  ;;  %409 = vst [vmem:[#allocation5 + $0x78] sm:$0xff] %v400_v19 }
 0x399   :  { %537 = shalt.err (!%p534_p12)
}
 0x39a   :  { %s538_s12 = scalar_lea.hbm %s726_s3, 2048 }
 0x39b   :  { %p539_p13 = scmp.ne.s32.totalorder %s726_s3, %s538_s12  ;;  %p542_p0 = scmp.lt.u32.totalorder %s538_s12, %s726_s3 }
 0x39d   :  { %p544_p1 = pnand %p542_p0, %p539_p13 }
 0x39f   :  { %547 = shalt.err (!%p544_p1)
}
 0x3a0   :  { %421 = dma.vmem_to_hbm [thread:$0]  %s416_s8, 2048, %s726_s3, [#allocation4], %s553_s22, %s553_s22, %s554_s23  }
 0x3a1   :  { %550 = dma.done.wait [#allocation4], 2048  }
 0x3a2   :  { %551 = vsyncadd [#allocation4], 4294965248 }
 0x3a3   :  { %425 = vsyncpa [#allocation3], 1 }
 0x3a4   :  { %426 = vsyncpa [#allocation4], 1 }

</bundles_post_ra>
